<compile_context>
chip_gen: v5e
topology: v5e:2x2
jax: 0.10.0
libtpu: 0.0.40
codegen_flags: <defaults>
</compile_context>

<pallas_src>
import functools
import math

import jax
import jax.numpy as jnp
from jax import lax
from jax.experimental import pallas as pl
from jax.experimental.pallas import tpu as pltpu


# ----------------------------------------------------------------------------
# Per-generation VMEM budget (cached).
# ----------------------------------------------------------------------------
_VMEM_LIMIT_CACHE = [None]


def _vmem_limit_bytes():
    if _VMEM_LIMIT_CACHE[0] is None:
        cap = 64 * 1024 * 1024
        try:
            cap = int(pltpu.get_tpu_info().vmem_capacity_bytes)
        except Exception:
            pass
        # ~75% of physical VMEM, capped: ~96 MiB on 128 MiB parts (v5e/v6e),
        # ~48 MiB on 64 MiB parts (v7x).
        _VMEM_LIMIT_CACHE[0] = min(cap * 3 // 4, 100 * 1024 * 1024)
    return _VMEM_LIMIT_CACHE[0]


def _pick_tile(dim, target, align):
    """Largest divisor of `dim` that is <= target and align-aligned; falls
    back to the full dimension (always legal for BlockSpec)."""
    if dim <= target:
        return dim
    for t in range(min(target, dim), align - 1, -1):
        if dim % t == 0 and t % align == 0:
            return t
    return dim


# Hand-rolled, numerically stable activations built from primitives that are
# guaranteed to lower in Mosaic.
def _log_sigmoid(x):
    # log(sigmoid(x)) = min(x, 0) - log(1 + exp(-|x|))
    return jnp.minimum(x, 0.0) - jnp.log(1.0 + jnp.exp(-jnp.abs(x)))


def _sigmoid(x):
    return 1.0 / (1.0 + jnp.exp(-x))


# ----------------------------------------------------------------------------
# Fused input projections: one pass over x producing q, k, v, g and the
# low-rank gate logits gk.  One MXU matmul per (M, K) tile against the single
# concatenated bf16 weight [Wq*scale | Wk | Wv | Wg | Wgk1]; the f32
# accumulator lives in VMEM scratch and is sliced on the final K step.
# ----------------------------------------------------------------------------
def _proj_kernel(x_ref, w_ref, wgk2_ref, b2_ref,
                 q_ref, k_ref, v_ref, g_ref, gk_ref,
                 acc_ref, *, key_dim, value_dim):
    kstep = pl.program_id(1)

    @pl.when(kstep == 0)
    def _():
        acc_ref[...] = jnp.zeros_like(acc_ref)

    acc_ref[...] += jnp.dot(x_ref[...].astype(jnp.bfloat16), w_ref[...],
                            preferred_element_type=jnp.float32)

    @pl.when(kstep == pl.num_programs(1) - 1)
    def _():
        kd, vd = key_dim, value_dim
        acc = acc_ref[...]
        q_ref[...] = acc[:, :kd].astype(q_ref.dtype)
        k_ref[...] = acc[:, kd:2 * kd].astype(k_ref.dtype)
        v_ref[...] = acc[:, 2 * kd:2 * kd + vd].astype(v_ref.dtype)
        g_ref[...] = acc[:, 2 * kd + vd:2 * kd + 2 * vd].astype(g_ref.dtype)
        # Second stage of the low-rank gate projection + bias.  Wgk2 is tiny
        # (R x kd) so it stays f32 for gate-logit precision; negligible DMA.
        lr = acc[:, 2 * kd + 2 * vd:]
        gk = jnp.dot(lr, wgk2_ref[...],
                     preferred_element_type=jnp.float32) + b2_ref[...]
        gk_ref[...] = gk.astype(gk_ref.dtype)


def fused_projections(x2, w_big, wgk2, bgk2, *, key_dim, value_dim):
    M, K = x2.shape
    NF = w_big.shape[1]
    R = NF - 2 * key_dim - 2 * value_dim
    vmem_limit = _vmem_limit_bytes()
    big_vmem = vmem_limit >= 80 * 1024 * 1024
    tm = _pick_tile(M, 512 if big_vmem else 256, 16)
    tk = _pick_tile(K, 512, 128)
    grid = (M // tm, K // tk)

    cost = pl.CostEstimate(
        flops=2 * M * K * NF + 2 * M * R * key_dim,
        transcendentals=0,
        bytes_accessed=int(M * K * x2.dtype.itemsize
                           + K * NF * 2 + R * key_dim * 4 + key_dim * 4
                           + M * (2 * key_dim + 2 * value_dim + key_dim) * 2),
    )
    kernel = functools.partial(_proj_kernel, key_dim=key_dim,
                               value_dim=value_dim)
    return pl.pallas_call(
        kernel,
        out_shape=(
            jax.ShapeDtypeStruct((M, key_dim), jnp.bfloat16),    # q (scaled)
            jax.ShapeDtypeStruct((M, key_dim), jnp.bfloat16),    # k
            jax.ShapeDtypeStruct((M, value_dim), jnp.bfloat16),  # v
            jax.ShapeDtypeStruct((M, value_dim), jnp.bfloat16),  # g
            jax.ShapeDtypeStruct((M, key_dim), jnp.bfloat16),    # gk logits
        ),
        grid=grid,
        in_specs=[
            pl.BlockSpec((tm, tk), lambda i, k: (i, k)),          # x
            pl.BlockSpec((tk, NF), lambda i, k: (k, 0)),          # fused W (bf16)
            pl.BlockSpec((R, key_dim), lambda i, k: (0, 0)),      # Wgk2
            pl.BlockSpec((1, key_dim), lambda i, k: (0, 0)),      # bias
        ],
        out_specs=(
            pl.BlockSpec((tm, key_dim), lambda i, k: (i, 0)),
            pl.BlockSpec((tm, key_dim), lambda i, k: (i, 0)),
            pl.BlockSpec((tm, value_dim), lambda i, k: (i, 0)),
            pl.BlockSpec((tm, value_dim), lambda i, k: (i, 0)),
            pl.BlockSpec((tm, key_dim), lambda i, k: (i, 0)),
        ),
        scratch_shapes=[pltpu.VMEM((tm, NF), jnp.float32)],
        compiler_params=pltpu.CompilerParams(
            dimension_semantics=("parallel", "arbitrary"),
            vmem_limit_bytes=vmem_limit),
        cost_estimate=cost,
    )(x2, w_big, wgk2, bgk2)


# ----------------------------------------------------------------------------
# Generic (M, N, K)-tiled bf16 matmul with f32 VMEM accumulator (o_proj).
# ----------------------------------------------------------------------------
def _matmul_kernel(x_ref, w_ref, o_ref, acc_ref):
    @pl.when(pl.program_id(2) == 0)
    def _():
        acc_ref[...] = jnp.zeros_like(acc_ref)

    acc_ref[...] += jnp.dot(x_ref[...], w_ref[...],
                            preferred_element_type=jnp.float32)

    @pl.when(pl.program_id(2) == pl.num_programs(2) - 1)
    def _():
        o_ref[...] = acc_ref[...].astype(o_ref.dtype)


def tiled_matmul(x, w, *, out_dtype=jnp.float32):
    if x.dtype != jnp.bfloat16:
        x = x.astype(jnp.bfloat16)
    if w.dtype != jnp.bfloat16:
        w = w.astype(jnp.bfloat16)
    M, K = x.shape
    K2, N = w.shape
    assert K == K2
    vmem_limit = _vmem_limit_bytes()
    big_vmem = vmem_limit >= 80 * 1024 * 1024
    tm = _pick_tile(M, 512 if big_vmem else 256, 16)
    tn = _pick_tile(N, 1024 if big_vmem else 512, 128)
    tk = _pick_tile(K, 512, 128)
    grid = (M // tm, N // tn, K // tk)
    cost = pl.CostEstimate(
        flops=2 * M * N * K, transcendentals=0,
        bytes_accessed=int(M * K * 2 + K * N * 2
                           + M * N * jnp.dtype(out_dtype).itemsize))
    return pl.pallas_call(
        _matmul_kernel,
        out_shape=jax.ShapeDtypeStruct((M, N), out_dtype),
        grid=grid,
        in_specs=[
            pl.BlockSpec((tm, tk), lambda i, j, k: (i, k)),
            pl.BlockSpec((tk, tn), lambda i, j, k: (k, j)),
        ],
        out_specs=pl.BlockSpec((tm, tn), lambda i, j, k: (i, j)),
        scratch_shapes=[pltpu.VMEM((tm, tn), jnp.float32)],
        compiler_params=pltpu.CompilerParams(
            dimension_semantics=("parallel", "parallel", "arbitrary"),
            vmem_limit_bytes=vmem_limit),
        cost_estimate=cost,
    )(x, w)


# ----------------------------------------------------------------------------
# GLA core: chunked gated-linear-attention recurrence + fused RMSNorm-swish
# gate.  One grid step = one (batch, head-group, time-chunk); the per-head
# recurrent state (stored transposed, [H, dv, dk], f32) is carried in VMEM
# scratch across the (sequential, "arbitrary") chunk axis.
# ----------------------------------------------------------------------------
def _gla_kernel(q_ref, k_ref, v_ref, gk_ref, g_ref, ltri_ref, w_ref,
                o_ref, state_ref, *, num_heads, dk, dv, eps, normalizer):
    c = pl.program_id(2)

    @pl.when(c == 0)
    def _():
        state_ref[...] = jnp.zeros_like(state_ref)

    q = q_ref[...].astype(jnp.float32)          # q already carries dk^-0.5
    k = k_ref[...].astype(jnp.float32)
    v = v_ref[...]                              # bf16, direct MXU operand
    g = g_ref[...].astype(jnp.float32)
    ltri = ltri_ref[...]                        # [C, C] f32 lower-tri (incl diag)
    w = w_ref[...]                              # [1, dv] RMSNorm weight

    # log decay, kept in f32.  gk <= 0.
    gk = _log_sigmoid(gk_ref[...].astype(jnp.float32)) / normalizer
    # Inclusive cumulative log-decay within the chunk via tri-matmul.  Small
    # f32 x f32 matmul (Mosaic runs it multi-pass on the MXU); cost negligible
    # next to the bf16 state-path matmuls below.
    bcum = jnp.dot(ltri, gk, preferred_element_type=jnp.float32)   # [C, HK]
    btot = bcum[-1:, :]                                            # [1, HK]

    decay_q = jnp.exp(bcum)                     # <= 1, bounded      (EUP #1)
    q_dec = q * decay_q
    # exp(-bcum) via cheap approx reciprocal of the already-computed exp.
    # TODO(synk): same overflow exposure as exp(-bcum) for extremely negative
    # cumulative gates; add FLA-style sub-chunk rescaling before chunk > 64.
    k_intra = k * pl.reciprocal(decay_q, approx=True)
    k_state = k * jnp.exp(btot - bcum)          # <= 1, bounded      (EUP #2)
    decay_tot = jnp.exp(btot)                   # [1, HK], tiny

    dv_aligned = (dv % 128 == 0)
    out_parts = []
    for h in range(num_heads):
        ks_ = slice(h * dk, (h + 1) * dk)
        vs_ = slice(h * dv, (h + 1) * dv)
        qh = q_dec[:, ks_].astype(jnp.bfloat16)            # [C, dk] bf16
        s_prev = state_ref[h]                              # [dv, dk] f32

        # intra-chunk causal attention (bf16 MXU operands, f32 accumulation).
        attn = lax.dot_general(qh, k_intra[:, ks_].astype(jnp.bfloat16),
                               (((1,), (1,)), ((), ())),
                               preferred_element_type=jnp.float32)  # [C, C]
        attn = attn * ltri
        o_h = jnp.dot(attn.astype(jnp.bfloat16), v[:, vs_],
                      preferred_element_type=jnp.float32)           # [C, dv]
        # inter-chunk contribution from the carried state (bf16 operands,
        # f32 accumulation; the state itself stays f32 in scratch).
        o_h = o_h + lax.dot_general(qh, s_prev.astype(jnp.bfloat16),
                                    (((1,), (1,)), ((), ())),
                                    preferred_element_type=jnp.float32)

        # state update: S^T <- S^T * exp(btot) + v^T (k * exp(btot - bcum))
        s_new = decay_tot[:, ks_] * s_prev + lax.dot_general(
            v[:, vs_], k_state[:, ks_].astype(jnp.bfloat16),
            (((0,), (0,)), ((), ())),
            preferred_element_type=jnp.float32)                     # [dv, dk]
        state_ref[h] = s_new

        # fused per-head RMSNorm + swish output gate (f32 VPU/EUP math).
        gh = g[:, vs_]
        var = jnp.mean(o_h * o_h, axis=-1, keepdims=True)
        o_n = o_h * lax.rsqrt(var + eps) * w
        o_gated = o_n * (gh * _sigmoid(gh))

        if dv_aligned:
            # lane-aligned per-head store: no concat, no H live f32 parts.
            o_ref[:, vs_] = o_gated.astype(o_ref.dtype)
        else:
            out_parts.append(o_gated)

    if not dv_aligned:
        o_ref[...] = jnp.concatenate(out_parts, axis=-1).astype(o_ref.dtype)


def gla_attention(q, k, v, gk, g, norm_w, *, num_heads, chunk, eps,
                  normalizer, head_groups=1):
    B, T, HK = q.shape
    HV = v.shape[-1]
    G = head_groups
    dk = HK // num_heads
    dv = HV // num_heads
    hpg = num_heads // G
    C = chunk
    NC = T // C
    vmem_limit = _vmem_limit_bytes()

    # Hoisted constant: causal lower-triangular matrix (mask + cumsum matmul).
    ltri = jnp.tril(jnp.ones((C, C), jnp.float32))

    flops = B * NC * (2 * C * C * HK
                      + num_heads * (2 * C * C * dk + 2 * C * C * dv
                                     + 4 * C * dk * dv))
    transc = B * T * (4 * HK + 2 * HV)
    bytes_accessed = int(2 * B * T * (3 * HK + 2 * HV) + 2 * B * T * HV
                         + C * C * 4 + dv * 4)
    cost = pl.CostEstimate(flops=int(flops), transcendentals=int(transc),
                           bytes_accessed=bytes_accessed)

    kernel = functools.partial(_gla_kernel, num_heads=hpg, dk=dk, dv=dv,
                               eps=eps, normalizer=normalizer)
    return pl.pallas_call(
        kernel,
        out_shape=jax.ShapeDtypeStruct((B, T, HV), jnp.bfloat16),
        grid=(B, G, NC),
        in_specs=[
            pl.BlockSpec((None, C, HK // G), lambda b, g, c: (b, c, g)),  # q
            pl.BlockSpec((None, C, HK // G), lambda b, g, c: (b, c, g)),  # k
            pl.BlockSpec((None, C, HV // G), lambda b, g, c: (b, c, g)),  # v
            pl.BlockSpec((None, C, HK // G), lambda b, g, c: (b, c, g)),  # gk
            pl.BlockSpec((None, C, HV // G), lambda b, g, c: (b, c, g)),  # g
            pl.BlockSpec((C, C), lambda b, g, c: (0, 0)),                 # ltri
            pl.BlockSpec((1, dv), lambda b, g, c: (0, 0)),                # w
        ],
        out_specs=pl.BlockSpec((None, C, HV // G), lambda b, g, c: (b, c, g)),
        scratch_shapes=[pltpu.VMEM((hpg, dv, dk), jnp.float32)],
        compiler_params=pltpu.CompilerParams(
            dimension_semantics=("parallel", "parallel", "arbitrary"),
            vmem_limit_bytes=vmem_limit),
        cost_estimate=cost,
    )(q, k, v, gk, g, ltri, norm_w)


# ----------------------------------------------------------------------------
# Full GatedLinearAttention forward.
# ----------------------------------------------------------------------------
def gla_forward(params, x, *, num_heads, gate_logit_normalizer=16,
                norm_eps=1e-5, chunk_size=64):
    B, T, hidden = x.shape
    key_dim = params["Wgk2"].shape[1]
    value_dim = params["Wo"].shape[0]
    H = num_heads

    x2 = x.reshape(B * T, hidden)
    q, k, v, g, gk = fused_projections(
        x2, params["W_big"], params["Wgk2"], params["bgk2"],
        key_dim=key_dim, value_dim=value_dim)

    chunk = T if T <= chunk_size else chunk_size
    assert T % chunk == 0, "sequence length must be a multiple of the chunk"

    # Head-group grid axis: use the 2nd TensorCore on v7x when the batch axis
    # alone doesn't split evenly, but only if per-group widths stay 128-lane
    # aligned (otherwise G=1, identical to the single-group path).
    head_groups = 1
    if (B % 2 == 1 and H % 2 == 0
            and (key_dim // 2) % 128 == 0 and (value_dim // 2) % 128 == 0):
        head_groups = 2

    # Head-packed, lane-dense [B, T, H*d] layout throughout (no transposes);
    # the GLA kernel slices per-head lane ranges internally.
    oh = gla_attention(q.reshape(B, T, key_dim), k.reshape(B, T, key_dim),
                       v.reshape(B, T, value_dim), gk.reshape(B, T, key_dim),
                       g.reshape(B, T, value_dim), params["g_norm_w"],
                       num_heads=H, chunk=chunk, eps=norm_eps,
                       normalizer=float(gate_logit_normalizer),
                       head_groups=head_groups)

    out = tiled_matmul(oh.reshape(B * T, value_dim), params["Wo"],
                       out_dtype=x.dtype)
    return out.reshape(B, T, hidden)


# ----------------------------------------------------------------------------
# Deterministic parameter init (xavier_uniform, gain = 2 ** -2.5, zero bias).
# The q/k/v/g/gk1 weights are concatenated and stored bf16; the q scale
# dk**-0.5 is folded into Wq's columns.
# ----------------------------------------------------------------------------
def init_params(key, hidden_size, num_heads, expand_k, expand_v,
                gate_low_rank_dim):
    key_dim = int(hidden_size * expand_k)
    value_dim = int(hidden_size * expand_v)
    dk = key_dim // num_heads
    dv = value_dim // num_heads
    gain = 2.0 ** -2.5
    ks = jax.random.split(key, 7)

    def xavier(k, fan_in, fan_out):
        lim = gain * math.sqrt(6.0 / (fan_in + fan_out))
        # stored as [in, out] (torch Linear weight [out, in] transposed)
        return jax.random.uniform(k, (fan_in, fan_out), jnp.float32, -lim, lim)

    wq = xavier(ks[0], hidden_size, key_dim) * (dk ** -0.5)   # folded scale
    wk = xavier(ks[1], hidden_size, key_dim)
    wv = xavier(ks[2], hidden_size, value_dim)
    wg = xavier(ks[3], hidden_size, value_dim)
    wgk1 = xavier(ks[4], hidden_size, gate_low_rank_dim)
    return dict(
        # [Wq*dk^-0.5 | Wk | Wv | Wg | Wgk1], bf16 (dominant DMA stream).
        W_big=jnp.concatenate([wq, wk, wv, wg, wgk1],
                              axis=1).astype(jnp.bfloat16),
        Wgk2=xavier(ks[5], gate_low_rank_dim, key_dim),       # tiny, f32
        bgk2=jnp.zeros((1, key_dim), jnp.float32),
        Wo=xavier(ks[6], value_dim, hidden_size).astype(jnp.bfloat16),
        g_norm_w=jnp.ones((1, dv), jnp.float32),              # RMSNorm weight
    )


if __name__ == "__main__":
    # Small, module-consistent shapes.
    B, T, hidden = 2, 8, 32
    num_heads = 4
    expand_k, expand_v = 0.5, 1.0
    gate_low_rank_dim = 16

    root = jax.random.PRNGKey(0)
    pkey, xkey = jax.random.split(root)
    params = init_params(pkey, hidden, num_heads, expand_k, expand_v,
                         gate_low_rank_dim)
    x = jax.random.normal(xkey, (B, T, hidden), jnp.float32)

    out = gla_forward(params, x, num_heads=num_heads,
                      gate_logit_normalizer=16, norm_eps=1e-5)
    jax.block_until_ready(out)
    assert out.shape == (B, T, hidden)
    print("KERNEL_OK")
</pallas_src>

<mosaic_0001>
module attributes {stable_mosaic.version = 11 : i64} {
  func.func @_proj_kernel(%arg0: i32, %arg1: i32, %arg2: memref<16x32xf32, #tpu.memory_space<vmem>>, %arg3: memref<32x112xbf16, #tpu.memory_space<vmem>>, %arg4: memref<16x16xf32, #tpu.memory_space<vmem>>, %arg5: memref<1x16xf32, #tpu.memory_space<vmem>>, %arg6: memref<16x16xbf16, #tpu.memory_space<vmem>>, %arg7: memref<16x16xbf16, #tpu.memory_space<vmem>>, %arg8: memref<16x32xbf16, #tpu.memory_space<vmem>>, %arg9: memref<16x32xbf16, #tpu.memory_space<vmem>>, %arg10: memref<16x16xbf16, #tpu.memory_space<vmem>>, %arg11: memref<16x112xf32, #tpu.memory_space<vmem>>) attributes {dimension_semantics = [#tpu.dimension_semantics<parallel>, #tpu.dimension_semantics<arbitrary>], iteration_bounds = array<i64: 1, 1>, scalar_prefetch = 0 : i64, scratch_operands = 1 : i64, tpu.core_type = #tpu.core_type<tc>, window_params = [{transform_indices = @transform_0, window_bounds = array<i64: 16, 32>}, {transform_indices = @transform_1, window_bounds = array<i64: 32, 112>}, {pipeline_mode = #tpu.pipeline_mode<synchronous>, transform_indices = @transform_2, window_bounds = array<i64: 16, 16>}, {pipeline_mode = #tpu.pipeline_mode<synchronous>, transform_indices = @transform_3, window_bounds = array<i64: 1, 16>}, {transform_indices = @transform_4, window_bounds = array<i64: 16, 16>}, {transform_indices = @transform_5, window_bounds = array<i64: 16, 16>}, {transform_indices = @transform_6, window_bounds = array<i64: 16, 32>}, {transform_indices = @transform_7, window_bounds = array<i64: 16, 32>}, {transform_indices = @transform_8, window_bounds = array<i64: 16, 16>}]} {
    %c0_i32 = arith.constant 0 : i32
    %0 = arith.cmpi eq, %arg1, %c0_i32 : i32
    %1 = arith.extui %0 : i1 to i32
    %c0_i32_0 = arith.constant 0 : i32
    %2 = arith.cmpi ne, %1, %c0_i32_0 : i32
    scf.if %2 {
      %cst_10 = arith.constant 0.000000e+00 : f32
      %13 = vector.broadcast %cst_10 : f32 to vector<16x112xf32>
      %c0_11 = arith.constant 0 : index
      %c0_12 = arith.constant 0 : index
      %14 = vector.load %arg11[%c0_11, %c0_12] : memref<16x112xf32, #tpu.memory_space<vmem>>, vector<16x112xf32>
      tpu.vector_store %arg11[%c0_11, %c0_12], %13 {strides = array<i32>} : memref<16x112xf32, #tpu.memory_space<vmem>>, vector<16x112xf32>,
    } else {
    }
    %c0 = arith.constant 0 : index
    %c0_1 = arith.constant 0 : index
    %3 = vector.load %arg11[%c0, %c0_1] : memref<16x112xf32, #tpu.memory_space<vmem>>, vector<16x112xf32>
    %c0_2 = arith.constant 0 : index
    %c0_3 = arith.constant 0 : index
    %4 = vector.load %arg2[%c0_2, %c0_3] : memref<16x32xf32, #tpu.memory_space<vmem>>, vector<16x32xf32>
    %5 = arith.truncf %4 : vector<16x32xf32> to vector<16x32xbf16>
    %c0_4 = arith.constant 0 : index
    %c0_5 = arith.constant 0 : index
    %6 = vector.load %arg3[%c0_4, %c0_5] : memref<32x112xbf16, #tpu.memory_space<vmem>>, vector<32x112xbf16>
    %cst = arith.constant dense<0.000000e+00> : vector<16x112xf32>
    %7 = tpu.matmul %5, %6, %cst {dimension_numbers = #tpu.dot_dimension_numbers<[1], [0], [0], [1], [0, 0, 1, 1], [], []>} : vector<16x32xbf16>, vector<32x112xbf16>, vector<16x112xf32> -> vector<16x112xf32>
    %8 = arith.addf %3, %7 : vector<16x112xf32>
    %c0_6 = arith.constant 0 : index
    %c0_7 = arith.constant 0 : index
    %9 = vector.load %arg11[%c0_6, %c0_7] : memref<16x112xf32, #tpu.memory_space<vmem>>, vector<16x112xf32>
    tpu.vector_store %arg11[%c0_6, %c0_7], %8 {strides = array<i32>} : memref<16x112xf32, #tpu.memory_space<vmem>>, vector<16x112xf32>,
    %c0_i32_8 = arith.constant 0 : i32
    %10 = arith.cmpi eq, %arg1, %c0_i32_8 : i32
    %11 = arith.extui %10 : i1 to i32
    %c0_i32_9 = arith.constant 0 : i32
    %12 = arith.cmpi ne, %11, %c0_i32_9 : i32
    scf.if %12 {
      %c0_10 = arith.constant 0 : index
      %c0_11 = arith.constant 0 : index
      %13 = vector.load %arg11[%c0_10, %c0_11] : memref<16x112xf32, #tpu.memory_space<vmem>>, vector<16x112xf32>
      %14 = vector.extract_strided_slice %13 {offsets = [0, 0], sizes = [16, 16], strides = [1, 1]} : vector<16x112xf32> to vector<16x16xf32>
      %15 = arith.truncf %14 : vector<16x16xf32> to vector<16x16xbf16>
      %c0_12 = arith.constant 0 : index
      %c0_13 = arith.constant 0 : index
      %16 = vector.load %arg6[%c0_12, %c0_13] : memref<16x16xbf16, #tpu.memory_space<vmem>>, vector<16x16xbf16>
      tpu.vector_store %arg6[%c0_12, %c0_13], %15 {strides = array<i32>} : memref<16x16xbf16, #tpu.memory_space<vmem>>, vector<16x16xbf16>,
      %17 = vector.extract_strided_slice %13 {offsets = [0, 16], sizes = [16, 16], strides = [1, 1]} : vector<16x112xf32> to vector<16x16xf32>
      %18 = arith.truncf %17 : vector<16x16xf32> to vector<16x16xbf16>
      %c0_14 = arith.constant 0 : index
      %c0_15 = arith.constant 0 : index
      %19 = vector.load %arg7[%c0_14, %c0_15] : memref<16x16xbf16, #tpu.memory_space<vmem>>, vector<16x16xbf16>
      tpu.vector_store %arg7[%c0_14, %c0_15], %18 {strides = array<i32>} : memref<16x16xbf16, #tpu.memory_space<vmem>>, vector<16x16xbf16>,
      %20 = vector.extract_strided_slice %13 {offsets = [0, 32], sizes = [16, 32], strides = [1, 1]} : vector<16x112xf32> to vector<16x32xf32>
      %21 = arith.truncf %20 : vector<16x32xf32> to vector<16x32xbf16>
      %c0_16 = arith.constant 0 : index
      %c0_17 = arith.constant 0 : index
      %22 = vector.load %arg8[%c0_16, %c0_17] : memref<16x32xbf16, #tpu.memory_space<vmem>>, vector<16x32xbf16>
      tpu.vector_store %arg8[%c0_16, %c0_17], %21 {strides = array<i32>} : memref<16x32xbf16, #tpu.memory_space<vmem>>, vector<16x32xbf16>,
      %23 = vector.extract_strided_slice %13 {offsets = [0, 64], sizes = [16, 32], strides = [1, 1]} : vector<16x112xf32> to vector<16x32xf32>
      %24 = arith.truncf %23 : vector<16x32xf32> to vector<16x32xbf16>
      %c0_18 = arith.constant 0 : index
      %c0_19 = arith.constant 0 : index
      %25 = vector.load %arg9[%c0_18, %c0_19] : memref<16x32xbf16, #tpu.memory_space<vmem>>, vector<16x32xbf16>
      tpu.vector_store %arg9[%c0_18, %c0_19], %24 {strides = array<i32>} : memref<16x32xbf16, #tpu.memory_space<vmem>>, vector<16x32xbf16>,
      %26 = vector.extract_strided_slice %13 {offsets = [0, 96], sizes = [16, 16], strides = [1, 1]} : vector<16x112xf32> to vector<16x16xf32>
      %c0_20 = arith.constant 0 : index
      %c0_21 = arith.constant 0 : index
      %27 = vector.load %arg4[%c0_20, %c0_21] : memref<16x16xf32, #tpu.memory_space<vmem>>, vector<16x16xf32>
      %cst_22 = arith.constant dense<0.000000e+00> : vector<16x16xf32>
      %28 = tpu.matmul %26, %27, %cst_22 {dimension_numbers = #tpu.dot_dimension_numbers<[1], [0], [0], [1], [0, 0, 1, 1], [], []>} : vector<16x16xf32>, vector<16x16xf32>, vector<16x16xf32> -> vector<16x16xf32>
      %c0_23 = arith.constant 0 : index
      %c0_24 = arith.constant 0 : index
      %29 = vector.load %arg5[%c0_23, %c0_24] : memref<1x16xf32, #tpu.memory_space<vmem>>, vector<1x16xf32>
      %30 = vector.broadcast %29 : vector<1x16xf32> to vector<16x16xf32>
      %31 = arith.addf %28, %30 : vector<16x16xf32>
      %32 = arith.truncf %31 : vector<16x16xf32> to vector<16x16xbf16>
      %c0_25 = arith.constant 0 : index
      %c0_26 = arith.constant 0 : index
      %33 = vector.load %arg10[%c0_25, %c0_26] : memref<16x16xbf16, #tpu.memory_space<vmem>>, vector<16x16xbf16>
      tpu.vector_store %arg10[%c0_25, %c0_26], %32 {strides = array<i32>} : memref<16x16xbf16, #tpu.memory_space<vmem>>, vector<16x16xbf16>,
    } else {
    }
    return
  }
  func.func @transform_0(%arg0: i32, %arg1: i32) -> (i32, i32) {
    %c0_i32 = arith.constant 0 : i32
    return %arg0, %arg1 : i32, i32
  }
  func.func @transform_1(%arg0: i32, %arg1: i32) -> (i32, i32) {
    %c0_i32 = arith.constant 0 : i32
    %c0_i32_0 = arith.constant 0 : i32
    return %arg1, %c0_i32 : i32, i32
  }
  func.func @transform_2(%arg0: i32, %arg1: i32) -> (i32, i32) {
    %c0_i32 = arith.constant 0 : i32
    %c0_i32_0 = arith.constant 0 : i32
    %c0_i32_1 = arith.constant 0 : i32
    return %c0_i32, %c0_i32_0 : i32, i32
  }
  func.func @transform_3(%arg0: i32, %arg1: i32) -> (i32, i32) {
    %c0_i32 = arith.constant 0 : i32
    %c0_i32_0 = arith.constant 0 : i32
    %c0_i32_1 = arith.constant 0 : i32
    return %c0_i32, %c0_i32_0 : i32, i32
  }
  func.func @transform_4(%arg0: i32, %arg1: i32) -> (i32, i32) {
    %c0_i32 = arith.constant 0 : i32
    %c0_i32_0 = arith.constant 0 : i32
    return %arg0, %c0_i32 : i32, i32
  }
  func.func @transform_5(%arg0: i32, %arg1: i32) -> (i32, i32) {
    %c0_i32 = arith.constant 0 : i32
    %c0_i32_0 = arith.constant 0 : i32
    return %arg0, %c0_i32 : i32, i32
  }
  func.func @transform_6(%arg0: i32, %arg1: i32) -> (i32, i32) {
    %c0_i32 = arith.constant 0 : i32
    %c0_i32_0 = arith.constant 0 : i32
    return %arg0, %c0_i32 : i32, i32
  }
  func.func @transform_7(%arg0: i32, %arg1: i32) -> (i32, i32) {
    %c0_i32 = arith.constant 0 : i32
    %c0_i32_0 = arith.constant 0 : i32
    return %arg0, %c0_i32 : i32, i32
  }
  func.func @transform_8(%arg0: i32, %arg1: i32) -> (i32, i32) {
    %c0_i32 = arith.constant 0 : i32
    %c0_i32_0 = arith.constant 0 : i32
    return %arg0, %c0_i32 : i32, i32
  }
}

</mosaic_0001>

<bundles_post_ra>
// kernel: tpu_custom_call.1
= control target key start
LH: loop header
LB: loop body
LE: loop exit
PB: predicated region body
PF: predicated region fallthrough
CT: control target
= control target key end

     0   :  { %14 = vsyncpa [#allocation4], 0  ;;  %s649_s0 = inlined_call_operand.hbm [shape: f32[16,32], index: 0, kind: input, shape index: {}]   ;;  %s650_s1 = inlined_call_operand.hbm [shape: bf16[32,112], index: 1, kind: input, shape index: {}]   ;;  %s651_s2 = inlined_call_operand.hbm [shape: f32[16,16], index: 2, kind: input, shape index: {}]   ;;  %s652_s3 = inlined_call_operand.vmem [shape: f32[1,16], index: 3, kind: input, shape index: {}]   ;;  %s653_s4 = inlined_call_operand.hbm [shape: bf16[16,16], index: 4, kind: output, shape index: {0}]   ;;  %s654_s5 = inlined_call_operand.hbm [shape: bf16[16,16], index: 5, kind: output, shape index: {1}]   ;;  %s655_s6 = inlined_call_operand.hbm [shape: bf16[16,32], index: 6, kind: output, shape index: {2}]   ;;  %s656_s7 = inlined_call_operand.hbm [shape: bf16[16,32], index: 7, kind: output, shape index: {3}]   ;;  %s657_s8 = inlined_call_operand.hbm [shape: bf16[16,16], index: 8, kind: output, shape index: {4}]  }
   0x1   :  { %15 = vsyncpa [#allocation7], 0 }
   0x2   :  { %16 = vsyncpa [#allocation5], 0 }
   0x3   :  { %17 = vsyncpa [#allocation11], 0  ;;  %s36_s29 = sshll.u32 %s650_s1, 4  ;;  %s37_s29 = int_to_ptr.hbm [resolvable:$true] %s36_s29 }
   0x4   :  { %18 = vsyncpa [#allocation14], 0  ;;  %s527_s30 = smov [#allocation6]   ;;  %s23_s12 = sshll.u32 %s649_s0, 4  ;;  %s24_s12 = int_to_ptr.hbm [resolvable:$true] %s23_s12 }
   0x5   :  { %s38_s9 = sshll.u32 %s527_s30, 4  ;;  %s528_s13 = smov 64   ;;  %s39_s9 = int_to_ptr.vmem [resolvable:$true] %s38_s9 }
   0x6   :  { %s529_s14 = smov 4   ;;  %s530_s15 = smov [#allocation3]  }
   0x7   :  { %44 = dma.hbm_to_vmem [thread:$0]  %s37_s29, 256, %s39_s9, [#allocation7], %s528_s13, %s528_s13, %s529_s14  }
   0x8   :  { %s25_s16 = sshll.u32 %s530_s15, 4  ;;  %s531_s1 = smov 128   ;;  %s26_s16 = int_to_ptr.vmem [resolvable:$true] %s25_s16 }
   0x9   :  { %s532_s17 = smov 8   ;;  %s49_s20 = sshll.u32 %s651_s2, 4  ;;  %s50_s20 = int_to_ptr.hbm [resolvable:$true] %s49_s20 }
   0xa   :  { %31 = dma.hbm_to_vmem [thread:$0]  %s24_s12, 256, %s26_s16, [#allocation4], %s531_s1, %s531_s1, %s532_s17  }
   0xb   :  { %s533_s21 = smov [#allocation8]  }
   0xc   :  { %s51_s0 = sshll.u32 %s533_s21, 4  ;;  %s52_s0 = int_to_ptr.vmem [resolvable:$true] %s51_s0 }
   0xd   :  { %57 = dma.hbm_to_vmem [thread:$0]  %s50_s20, 256, %s52_s0, [#allocation7], %s531_s1, %s531_s1, %s532_s17  }
   0xe   :  { %517 = dma.done.wait [#allocation4], 256  }
   0xf   :  { %518 = vsyncadd [#allocation4], 4294967040 }
  0x10   :  { %519 = dma.done.wait [#allocation7], 512  }
  0x11   :  { %520 = vsyncadd [#allocation7], 4294966784  ;;  %vm77_vm0 = vcmask 916480   ;;  %v534_v0 = vmov 0.0   ;;  %v307_v1 = vld [vmem:[#allocation6 + $0x8] sm:$0xff]  ;;  %v306_v2 = vld [vmem:[#allocation6] sm:$0xff] }
  0x12   :  { %78 = vst.msk [vmem:[#allocation2] sm:$0xff] %vm77_vm0, %v534_v0  ;;  %111 = vmatpush.bf16.msra.mxu0 %v307_v1  ;;  %v82_v3 = vld [vmem:[#allocation3] sm:$0xff]  ;;  %v83_v4 = vld [vmem:[#allocation3 + $0x8] sm:$0xff]  ;;  %vm101_vm1 = vcmask 261120   ;;  %vm131_vm2 = vcmask 125952   ;;  %s535_s2 = smov 32  }
  0x13   :  { %79 = vst.msk [vmem:[#allocation2 + $0x8] sm:$0xff] %vm77_vm0, %v534_v0  ;;  %v84_v5 = vpack.c.bf16 %v83_v4, %v82_v3  ;;  %s536_s22 = smov 112   ;;  %s537_s23 = smov 96   ;;  %v162_v16 = vld [vmem:[#allocation8 + $0x8] sm:$0xff]  ;;  %v161_v17 = vld [vmem:[#allocation8] sm:$0xff]  ;;  %vm150_vm3 = vcmask 257024  }
  0x14   :  { %192 = vmatpush.msra.mxu1 %v162_v16  ;;  %vm173_vm4 = vcmask 130048   ;;  %s538_s24 = smov [#allocation10]   ;;  %s224_s28 = sshll.u32 %s654_s5, 4  ;;  %v324_v26 = vld [vmem:[%s652_s3] ss:$0 sm:$0xff]  ;;  %s225_s28 = int_to_ptr.hbm [resolvable:$true] %s224_s28 }
  0x15   :  { %s222_s25 = sshll.u32 %s538_s24, 4  ;;  %s539_s29 = smov [#allocation13]   ;;  %s223_s25 = int_to_ptr.vmem [resolvable:$true] %s222_s25 }
  0x16   :  { %112 = vmatpush.bf16.msra.mxu0 %v306_v2  ;;  %193 = vmatpush.msra.mxu1 %v161_v17  ;;  %s248_s30 = sshll.u32 %s539_s29, 4  ;;  %s250_s11 = sshll.u32 %s656_s7, 4  ;;  %s249_s30 = int_to_ptr.vmem [resolvable:$true] %s248_s30  ;;  %s251_s11 = int_to_ptr.hbm [resolvable:$true] %s250_s11 }
  0x17   :  { %s211_s15 = sshll.u32 %s653_s4, 4  ;;  %s540_s16 = smov [#allocation9]   ;;  %s212_s15 = int_to_ptr.hbm [resolvable:$true] %s211_s15 }
  0x18   :  { %s209_s1 = sshll.u32 %s540_s16, 4  ;;  %s541_s7 = smov [#allocation12]   ;;  %s210_s1 = int_to_ptr.vmem [resolvable:$true] %s209_s1 }
  0x19   :  { %303 = vmatmul.msk.bf16.vlgmr.msra.gmra.mxu0 %vm101_vm1, %v84_v5  ;;  %v80_v6 = vld [vmem:[#allocation2] sm:$0xff]  ;;  %s235_s17 = sshll.u32 %s541_s7, 4  ;;  %s237_s4 = sshll.u32 %s655_s6, 4  ;;  %s236_s17 = int_to_ptr.vmem [resolvable:$true] %s235_s17  ;;  %s238_s4 = int_to_ptr.hbm [resolvable:$true] %s237_s4 }
  0x1a   :  { %v81_v9 = vld [vmem:[#allocation2 + $0x8] sm:$0xff]  ;;  %s542_s0 = smov [#allocation15]  }
  0x96   :  { %v114_v7 = vpop.f32.mrf.mxu0 }
  0x97   :  { %v119_v8 = vadd.f32 %v114_v7, %v80_v6 }
  0x99   :  { %122 = vst.msk [vmem:[#allocation2] sm:$0xff] %vm77_vm0, %v119_v8 }
  0x9e   :  { %v116_v10 = vpop.f32.mrf.mxu0 }
  0x9f   :  { %v120_v11 = vadd.f32 %v116_v10, %v81_v9 }
  0xa0   :  { %v127_v12 = vld [vmem:[#allocation2] sm:$0xff] }
  0xa1   :  { %123 = vst.msk [vmem:[#allocation2 + $0x8] sm:$0xff] %vm77_vm0, %v120_v11  ;;  %169 = vrot.lane.b32.xlu0 %v127_v12, %s535_s2  ;;  %v129_v13 = vpack.c.bf16 %v127_v12, %v127_v12 }
  0xa3   :  { %153 = vrot.lane.b32.xlu2 %v129_v13, %s528_s13  ;;  %136 = vrot.lane.b32.xlu1 %v129_v13, %s536_s22  ;;  %132 = vst.msk [vmem:[#allocation9] sm:$0xf] %vm131_vm2, %v129_v13 }
  0xa8   :  { %v128_v14 = vld [vmem:[#allocation2 + $0x8] sm:$0xff] }
  0xa9   :  { %v130_v15 = vpack.c.bf16 %v128_v14, %v128_v14  ;;  %171 = vrot.lane.b32.xlu0 %v128_v14, %s535_s2  ;;  %s261_s2 = sshll.u32 %s542_s0, 4  ;;  %s262_s2 = int_to_ptr.vmem [resolvable:$true] %s261_s2 }
  0xab   :  { %155 = vrot.lane.b32.xlu2 %v130_v15, %s528_s13  ;;  %138 = vrot.lane.b32.xlu1 %v130_v15, %s536_s22  ;;  %133 = vst.msk [vmem:[#allocation9 + $0x4] sm:$0xf] %vm131_vm2, %v130_v15 }
  0xac   :  { %217 = dma.vmem_to_hbm [thread:$0]  %s210_s1, 128, %s212_s15, [#allocation5], %s528_s13, %s528_s13, %s529_s14  }
  0xb1   :  { %144 = vrot.lane.b32.xlu0 %v129_v13, %s537_s23 }
  0xb3   :  { %146 = vrot.lane.b32.xlu1 %v130_v15, %s537_s23  ;;  %s263_s23 = sshll.u32 %s657_s8, 4  ;;  %s264_s23 = int_to_ptr.hbm [resolvable:$true] %s263_s23 }
  0xfd   :  { %v154_v18 = vpop.permute.xlu2 %153 }
  0xfe   :  { %159 = vst.msk [vmem:[#allocation13] sm:$0xf] %vm150_vm3, %v154_v18 }
 0x105   :  { %v156_v19 = vpop.permute.xlu2 %155 }
 0x106   :  { %160 = vst.msk [vmem:[#allocation13 + $0x4] sm:$0xf] %vm150_vm3, %v156_v19 }
 0x107   :  { %256 = dma.vmem_to_hbm [thread:$0]  %s249_s30, 128, %s251_s11, [#allocation14], %s528_s13, %s528_s13, %s529_s14  }
 0x113   :  { %v170_v20 = vpop.permute.xlu0 %169 }
 0x114   :  { %304 = vmatmul.msk.f32.vlgmr.msra.gmra.mxu1 %vm173_vm4, %v170_v20 }
 0x115   :  { %v137_v21 = vpop.permute.xlu1 %136 }
 0x116   :  { %142 = vst.msk [vmem:[#allocation10] sm:$0xf] %vm131_vm2, %v137_v21 }
 0x11b   :  { %v172_v22 = vpop.permute.xlu0 %171 }
 0x11c   :  { %305 = vmatmul.msk.f32.gmra.mxu1 %vm173_vm4, %v172_v22 }
 0x11d   :  { %v139_v23 = vpop.permute.xlu1 %138 }
 0x11e   :  { %143 = vst.msk [vmem:[#allocation10 + $0x4] sm:$0xf] %vm131_vm2, %v139_v23 }
 0x11f   :  { %230 = dma.vmem_to_hbm [thread:$0]  %s223_s25, 128, %s225_s28, [#allocation11], %s528_s13, %s528_s13, %s529_s14  }
 0x123   :  { %v145_v24 = vpop.permute.xlu0 %144 }
 0x124   :  { %151 = vst.msk [vmem:[#allocation12] sm:$0xf] %vm150_vm3, %v145_v24 }
 0x125   :  { %v147_v25 = vpop.permute.xlu1 %146 }
 0x126   :  { %152 = vst.msk [vmem:[#allocation12 + $0x4] sm:$0xf] %vm150_vm3, %v147_v25 }
 0x127   :  { %243 = dma.vmem_to_hbm [thread:$0]  %s236_s17, 128, %s238_s4, [#allocation11], %s528_s13, %s528_s13, %s529_s14  }
 0x191   :  { %v195_v27 = vpop.f32.mrf.mxu1 }
 0x192   :  { %v196_v28 = vadd.f32 %v324_v26, %v195_v27 }
 0x194   :  { %v201_v29 = vpack.c.bf16 %v196_v28, %v196_v28 }
 0x196   :  { %203 = vst.msk [vmem:[#allocation15] sm:$0xf] %vm131_vm2, %v201_v29 }
 0x199   :  { %v198_v30 = vpop.f32.mrf.mxu1 }
 0x19a   :  { %v199_v31 = vadd.f32 %v324_v26, %v198_v30 }
 0x19c   :  { %v202_v32 = vpack.c.bf16 %v199_v31, %v199_v31 }
 0x19e   :  { %204 = vst.msk [vmem:[#allocation15 + $0x4] sm:$0xf] %vm131_vm2, %v202_v32 }
 0x19f   :  { %269 = dma.vmem_to_hbm [thread:$0]  %s262_s2, 128, %s264_s23, [#allocation14], %s528_s13, %s528_s13, %s529_s14  }
 0x1a0   :  { %521 = dma.done.wait [#allocation5], 128  }
 0x1a1   :  { %522 = vsyncadd [#allocation5], 4294967168 }
 0x1a2   :  { %523 = dma.done.wait [#allocation11], 256  }
 0x1a3   :  { %524 = vsyncadd [#allocation11], 4294967040 }
 0x1a4   :  { %525 = dma.done.wait [#allocation14], 256  }
 0x1a5   :  { %526 = vsyncadd [#allocation14], 4294967040 }
 0x1a6   :  { %290 = vsyncpa [#allocation4], 1 }
 0x1a7   :  { %291 = vsyncpa [#allocation7], 1 }
 0x1a8   :  { %292 = vsyncpa [#allocation5], 1 }
 0x1a9   :  { %293 = vsyncpa [#allocation11], 1 }
 0x1aa   :  { %294 = vsyncpa [#allocation14], 1 }

</bundles_post_ra>
